<compile_context>
chip_gen: v7x
topology: tpu7x:2x2x1
jax: 0.10.0
libtpu: 0.0.40
codegen_flags: <defaults>
</compile_context>

<pallas_src>
import functools

import jax
import jax.numpy as jnp
from jax.experimental import pallas as pl
from jax.experimental.pallas import tpu as pltpu

_INV3 = 1.0 / 3.0


def _round_up(x: int, m: int) -> int:
    return ((x + m - 1) // m) * m


def _multigcn_kernel(x_ref, adj_ref, w1_ref, b1_ref, w2_ref, b2_ref,
                     w3_ref, b3_ref, out_ref, *, compute_dtype):
    # One grid step per batch element; batch dim is squeezed so refs are 2-D.
    adj = adj_ref[...].astype(compute_dtype)                     # (N, N)

    # Layer 1: o1 = adj @ (x @ W1 + b1)
    h1 = (jnp.dot(x_ref[...].astype(compute_dtype),
                  w1_ref[...].astype(compute_dtype),
                  preferred_element_type=jnp.float32) + b1_ref[...])
    o1 = jnp.dot(adj, h1.astype(compute_dtype),
                 preferred_element_type=jnp.float32)             # (N, Dout) f32

    # Layer 2: o2 = adj @ (o1 @ W2 + b2)
    h2 = (jnp.dot(o1.astype(compute_dtype),
                  w2_ref[...].astype(compute_dtype),
                  preferred_element_type=jnp.float32) + b2_ref[...])
    o2 = jnp.dot(adj, h2.astype(compute_dtype),
                 preferred_element_type=jnp.float32)

    # Layer 3: o3 = adj @ (o2 @ W3 + b3)
    h3 = (jnp.dot(o2.astype(compute_dtype),
                  w3_ref[...].astype(compute_dtype),
                  preferred_element_type=jnp.float32) + b3_ref[...])
    o3 = jnp.dot(adj, h3.astype(compute_dtype),
                 preferred_element_type=jnp.float32)

    # Residual average kept in values (no VMEM scratch round trip).
    out_ref[...] = ((o1 + o2 + o3) * _INV3).astype(out_ref.dtype)


def multigcn_forward(inputs, adj, params, *, compute_dtype=None):
    """inputs: (B, N, Din), adj: (B, N, N) -> (B, N, Dout)."""
    B, N, Din = inputs.shape
    Dout = params["w1"].shape[1]
    if compute_dtype is None:
        compute_dtype = inputs.dtype

    # Pad to TPU-friendly shapes: N -> mult of 8 (sublane),
    # Din/Dout -> mult of 128 (lane-dense output, full MXU lanes).
    Np = _round_up(N, 8)
    Dip = _round_up(Din, 128)
    Dop = _round_up(Dout, 128)

    x_p = jnp.pad(inputs, ((0, 0), (0, Np - N), (0, Dip - Din)))
    adj_p = jnp.pad(adj, ((0, 0), (0, Np - N), (0, Np - N)))
    w1 = jnp.pad(params["w1"], ((0, Dip - Din), (0, Dop - Dout)))
    w2 = jnp.pad(params["w2"], ((0, Dop - Dout), (0, Dop - Dout)))
    w3 = jnp.pad(params["w3"], ((0, Dop - Dout), (0, Dop - Dout)))
    b1 = jnp.pad(params["b1"], ((0, 0), (0, Dop - Dout)))
    b2 = jnp.pad(params["b2"], ((0, 0), (0, Dop - Dout)))
    b3 = jnp.pad(params["b3"], ((0, 0), (0, Dop - Dout)))

    itemsize = jnp.dtype(inputs.dtype).itemsize

    # Explicit scoped-VMEM budget (double-buffered tiles + weights + live f32).
    adj_b = Np * Np * itemsize
    x_b = Np * Dip * itemsize
    out_b = Np * Dop * itemsize
    w_b = (Dip * Dop + 2 * Dop * Dop + 3 * Dop) * itemsize
    live_b = 4 * Np * Dop * 4                     # h/o f32 intermediates headroom
    vmem_bytes = 2 * (adj_b + x_b + out_b) + 2 * w_b + live_b + (4 << 20)
    vmem_bytes = int(min(max(vmem_bytes, 16 << 20), 100 << 20))

    # Advisory cost estimate for XLA scheduling around the custom call.
    flops = B * (2 * Np * Dip * Dop            # x @ W1
                 + 2 * 2 * Np * Dop * Dop      # o1 @ W2, o2 @ W3
                 + 3 * 2 * Np * Np * Dop)      # three adj @ h
    bytes_accessed = B * (adj_b + x_b + out_b) + w_b
    cost = pl.CostEstimate(flops=int(flops), transcendentals=0,
                           bytes_accessed=int(bytes_accessed))

    kernel = functools.partial(_multigcn_kernel, compute_dtype=compute_dtype)

    out_p = pl.pallas_call(
        kernel,
        out_shape=jax.ShapeDtypeStruct((B, Np, Dop), inputs.dtype),
        grid_spec=pltpu.PrefetchScalarGridSpec(
            num_scalar_prefetch=0,
            grid=(B,),
            in_specs=[
                pl.BlockSpec((None, Np, Dip), lambda b: (b, 0, 0)),   # x  (2-D in kernel)
                pl.BlockSpec((None, Np, Np), lambda b: (b, 0, 0)),    # adj
                pl.BlockSpec((Dip, Dop), lambda b: (0, 0)),           # W1
                pl.BlockSpec((1, Dop), lambda b: (0, 0)),             # b1
                pl.BlockSpec((Dop, Dop), lambda b: (0, 0)),           # W2
                pl.BlockSpec((1, Dop), lambda b: (0, 0)),             # b2
                pl.BlockSpec((Dop, Dop), lambda b: (0, 0)),           # W3
                pl.BlockSpec((1, Dop), lambda b: (0, 0)),             # b3
            ],
            out_specs=pl.BlockSpec((None, Np, Dop), lambda b: (b, 0, 0)),
        ),
        compiler_params=pltpu.CompilerParams(
            dimension_semantics=("parallel",),
            vmem_limit_bytes=vmem_bytes),
        cost_estimate=cost,
    )(x_p, adj_p, w1, b1, w2, b2, w3, b3)

    # Slice padded rows / lanes back to the logical shape.
    return out_p[:, :N, :Dout]


def multigcn_reference(inputs, adj, params):
    """Pure-JAX reference matching the PyTorch module semantics."""
    def lin(x, w, b):
        return x @ w + b
    o1 = jnp.einsum("bij,bjd->bid", adj, lin(inputs, params["w1"], params["b1"]))
    o2 = jnp.einsum("bij,bjd->bid", adj, lin(o1, params["w2"], params["b2"]))
    o3 = jnp.einsum("bij,bjd->bid", adj, lin(o2, params["w3"], params["b3"]))
    return (o3 + o2 + o1) / 3.0


def init_params(key, in_dim, out_dim):
    # Deterministic synthetic init (uniform like nn.Linear default).
    ks = jax.random.split(key, 6)
    def u(k, shape, fan_in):
        bound = 1.0 / jnp.sqrt(fan_in)
        return jax.random.uniform(k, shape, jnp.float32, -bound, bound)
    return {
        "w1": u(ks[0], (in_dim, out_dim), in_dim),
        "b1": u(ks[1], (1, out_dim), in_dim),
        "w2": u(ks[2], (out_dim, out_dim), out_dim),
        "b2": u(ks[3], (1, out_dim), out_dim),
        "w3": u(ks[4], (out_dim, out_dim), out_dim),
        "b3": u(ks[5], (1, out_dim), out_dim),
    }


if __name__ == "__main__":
    B, N, IN_DIM, OUT_DIM = 2, 8, 16, 32

    key = jax.random.PRNGKey(0)
    k_x, k_adj, k_p = jax.random.split(key, 3)

    inputs = jax.random.normal(k_x, (B, N, IN_DIM), jnp.float32)
    # Row-normalized random adjacency (any (B, N, N) tensor works).
    adj_raw = jax.random.uniform(k_adj, (B, N, N), jnp.float32)
    adj = adj_raw / jnp.sum(adj_raw, axis=-1, keepdims=True)

    params = init_params(k_p, IN_DIM, OUT_DIM)

    # f32 compute in the demo so we can validate tightly; pass
    # compute_dtype=jnp.bfloat16 in production to halve the adj HBM stream.
    out = multigcn_forward(inputs, adj, params)
    out = jax.block_until_ready(out)

    ref = multigcn_reference(inputs, adj, params)
    assert out.shape == (B, N, OUT_DIM)
    assert jnp.allclose(out, ref, atol=1e-5, rtol=1e-5), "mismatch vs reference"

    print("KERNEL_OK")
</pallas_src>

<mosaic_0001>
module attributes {stable_mosaic.version = 11 : i64} {
  func.func @_multigcn_kernel(%arg0: i32, %arg1: memref<1x8x128xf32, #tpu.memory_space<vmem>>, %arg2: memref<1x8x8xf32, #tpu.memory_space<vmem>>, %arg3: memref<128x128xf32, #tpu.memory_space<vmem>>, %arg4: memref<1x128xf32, #tpu.memory_space<vmem>>, %arg5: memref<128x128xf32, #tpu.memory_space<vmem>>, %arg6: memref<1x128xf32, #tpu.memory_space<vmem>>, %arg7: memref<128x128xf32, #tpu.memory_space<vmem>>, %arg8: memref<1x128xf32, #tpu.memory_space<vmem>>, %arg9: memref<1x8x128xf32, #tpu.memory_space<vmem>>) attributes {dimension_semantics = [#tpu.dimension_semantics<parallel>], iteration_bounds = array<i64: 2>, scalar_prefetch = 0 : i64, scratch_operands = 0 : i64, tpu.core_type = #tpu.core_type<tc>, window_params = [{transform_indices = @transform_0, window_bounds = array<i64: 1, 8, 128>}, {transform_indices = @transform_1, window_bounds = array<i64: 1, 8, 8>}, {pipeline_mode = #tpu.pipeline_mode<synchronous>, transform_indices = @transform_2, window_bounds = array<i64: 128, 128>}, {pipeline_mode = #tpu.pipeline_mode<synchronous>, transform_indices = @transform_3, window_bounds = array<i64: 1, 128>}, {pipeline_mode = #tpu.pipeline_mode<synchronous>, transform_indices = @transform_4, window_bounds = array<i64: 128, 128>}, {pipeline_mode = #tpu.pipeline_mode<synchronous>, transform_indices = @transform_5, window_bounds = array<i64: 1, 128>}, {pipeline_mode = #tpu.pipeline_mode<synchronous>, transform_indices = @transform_6, window_bounds = array<i64: 128, 128>}, {pipeline_mode = #tpu.pipeline_mode<synchronous>, transform_indices = @transform_7, window_bounds = array<i64: 1, 128>}, {transform_indices = @transform_8, window_bounds = array<i64: 1, 8, 128>}]} {
    %c0 = arith.constant 0 : index
    %c0_0 = arith.constant 0 : index
    %c0_1 = arith.constant 0 : index
    %0 = vector.load %arg2[%c0, %c0_0, %c0_1] : memref<1x8x8xf32, #tpu.memory_space<vmem>>, vector<1x8x8xf32>
    %1 = vector.shape_cast %0 : vector<1x8x8xf32> to vector<8x8xf32>
    %c0_2 = arith.constant 0 : index
    %c0_3 = arith.constant 0 : index
    %c0_4 = arith.constant 0 : index
    %2 = vector.load %arg1[%c0_2, %c0_3, %c0_4] : memref<1x8x128xf32, #tpu.memory_space<vmem>>, vector<1x8x128xf32>
    %3 = vector.shape_cast %2 : vector<1x8x128xf32> to vector<8x128xf32>
    %c0_5 = arith.constant 0 : index
    %c0_6 = arith.constant 0 : index
    %4 = vector.load %arg3[%c0_5, %c0_6] : memref<128x128xf32, #tpu.memory_space<vmem>>, vector<128x128xf32>
    %cst = arith.constant dense<0.000000e+00> : vector<8x128xf32>
    %5 = tpu.matmul %3, %4, %cst {dimension_numbers = #tpu.dot_dimension_numbers<[1], [0], [0], [1], [0, 0, 1, 1], [], []>} : vector<8x128xf32>, vector<128x128xf32>, vector<8x128xf32> -> vector<8x128xf32>
    %c0_7 = arith.constant 0 : index
    %c0_8 = arith.constant 0 : index
    %6 = vector.load %arg4[%c0_7, %c0_8] : memref<1x128xf32, #tpu.memory_space<vmem>>, vector<1x128xf32>
    %7 = vector.broadcast %6 : vector<1x128xf32> to vector<8x128xf32>
    %8 = arith.addf %5, %7 : vector<8x128xf32>
    %cst_9 = arith.constant dense<0.000000e+00> : vector<8x128xf32>
    %9 = tpu.matmul %1, %8, %cst_9 {dimension_numbers = #tpu.dot_dimension_numbers<[1], [0], [0], [1], [0, 0, 1, 1], [], []>} : vector<8x8xf32>, vector<8x128xf32>, vector<8x128xf32> -> vector<8x128xf32>
    %c0_10 = arith.constant 0 : index
    %c0_11 = arith.constant 0 : index
    %10 = vector.load %arg5[%c0_10, %c0_11] : memref<128x128xf32, #tpu.memory_space<vmem>>, vector<128x128xf32>
    %cst_12 = arith.constant dense<0.000000e+00> : vector<8x128xf32>
    %11 = tpu.matmul %9, %10, %cst_12 {dimension_numbers = #tpu.dot_dimension_numbers<[1], [0], [0], [1], [0, 0, 1, 1], [], []>} : vector<8x128xf32>, vector<128x128xf32>, vector<8x128xf32> -> vector<8x128xf32>
    %c0_13 = arith.constant 0 : index
    %c0_14 = arith.constant 0 : index
    %12 = vector.load %arg6[%c0_13, %c0_14] : memref<1x128xf32, #tpu.memory_space<vmem>>, vector<1x128xf32>
    %13 = vector.broadcast %12 : vector<1x128xf32> to vector<8x128xf32>
    %14 = arith.addf %11, %13 : vector<8x128xf32>
    %cst_15 = arith.constant dense<0.000000e+00> : vector<8x128xf32>
    %15 = tpu.matmul %1, %14, %cst_15 {dimension_numbers = #tpu.dot_dimension_numbers<[1], [0], [0], [1], [0, 0, 1, 1], [], []>} : vector<8x8xf32>, vector<8x128xf32>, vector<8x128xf32> -> vector<8x128xf32>
    %c0_16 = arith.constant 0 : index
    %c0_17 = arith.constant 0 : index
    %16 = vector.load %arg7[%c0_16, %c0_17] : memref<128x128xf32, #tpu.memory_space<vmem>>, vector<128x128xf32>
    %cst_18 = arith.constant dense<0.000000e+00> : vector<8x128xf32>
    %17 = tpu.matmul %15, %16, %cst_18 {dimension_numbers = #tpu.dot_dimension_numbers<[1], [0], [0], [1], [0, 0, 1, 1], [], []>} : vector<8x128xf32>, vector<128x128xf32>, vector<8x128xf32> -> vector<8x128xf32>
    %c0_19 = arith.constant 0 : index
    %c0_20 = arith.constant 0 : index
    %18 = vector.load %arg8[%c0_19, %c0_20] : memref<1x128xf32, #tpu.memory_space<vmem>>, vector<1x128xf32>
    %19 = vector.broadcast %18 : vector<1x128xf32> to vector<8x128xf32>
    %20 = arith.addf %17, %19 : vector<8x128xf32>
    %cst_21 = arith.constant dense<0.000000e+00> : vector<8x128xf32>
    %21 = tpu.matmul %1, %20, %cst_21 {dimension_numbers = #tpu.dot_dimension_numbers<[1], [0], [0], [1], [0, 0, 1, 1], [], []>} : vector<8x8xf32>, vector<8x128xf32>, vector<8x128xf32> -> vector<8x128xf32>
    %22 = arith.addf %9, %15 : vector<8x128xf32>
    %23 = arith.addf %22, %21 : vector<8x128xf32>
    %cst_22 = arith.constant 0.333333343 : f32
    %24 = vector.broadcast %cst_22 : f32 to vector<8x128xf32>
    %25 = arith.mulf %23, %24 : vector<8x128xf32>
    %c0_23 = arith.constant 0 : index
    %c0_24 = arith.constant 0 : index
    %c0_25 = arith.constant 0 : index
    %26 = vector.load %arg9[%c0_23, %c0_24, %c0_25] : memref<1x8x128xf32, #tpu.memory_space<vmem>>, vector<1x8x128xf32>
    %27 = vector.shape_cast %26 : vector<1x8x128xf32> to vector<8x128xf32>
    %28 = vector.shape_cast %25 : vector<8x128xf32> to vector<1x8x128xf32>
    tpu.vector_store %arg9[%c0_23, %c0_24, %c0_25], %28 {strides = array<i32>} : memref<1x8x128xf32, #tpu.memory_space<vmem>>, vector<1x8x128xf32>,
    return
  }
  func.func @transform_0(%arg0: i32) -> (i32, i32, i32) {
    %c0_i32 = arith.constant 0 : i32
    %c0_i32_0 = arith.constant 0 : i32
    %c0_i32_1 = arith.constant 0 : i32
    return %arg0, %c0_i32, %c0_i32_0 : i32, i32, i32
  }
  func.func @transform_1(%arg0: i32) -> (i32, i32, i32) {
    %c0_i32 = arith.constant 0 : i32
    %c0_i32_0 = arith.constant 0 : i32
    %c0_i32_1 = arith.constant 0 : i32
    return %arg0, %c0_i32, %c0_i32_0 : i32, i32, i32
  }
  func.func @transform_2(%arg0: i32) -> (i32, i32) {
    %c0_i32 = arith.constant 0 : i32
    %c0_i32_0 = arith.constant 0 : i32
    %c0_i32_1 = arith.constant 0 : i32
    return %c0_i32, %c0_i32_0 : i32, i32
  }
  func.func @transform_3(%arg0: i32) -> (i32, i32) {
    %c0_i32 = arith.constant 0 : i32
    %c0_i32_0 = arith.constant 0 : i32
    %c0_i32_1 = arith.constant 0 : i32
    return %c0_i32, %c0_i32_0 : i32, i32
  }
  func.func @transform_4(%arg0: i32) -> (i32, i32) {
    %c0_i32 = arith.constant 0 : i32
    %c0_i32_0 = arith.constant 0 : i32
    %c0_i32_1 = arith.constant 0 : i32
    return %c0_i32, %c0_i32_0 : i32, i32
  }
  func.func @transform_5(%arg0: i32) -> (i32, i32) {
    %c0_i32 = arith.constant 0 : i32
    %c0_i32_0 = arith.constant 0 : i32
    %c0_i32_1 = arith.constant 0 : i32
    return %c0_i32, %c0_i32_0 : i32, i32
  }
  func.func @transform_6(%arg0: i32) -> (i32, i32) {
    %c0_i32 = arith.constant 0 : i32
    %c0_i32_0 = arith.constant 0 : i32
    %c0_i32_1 = arith.constant 0 : i32
    return %c0_i32, %c0_i32_0 : i32, i32
  }
  func.func @transform_7(%arg0: i32) -> (i32, i32) {
    %c0_i32 = arith.constant 0 : i32
    %c0_i32_0 = arith.constant 0 : i32
    %c0_i32_1 = arith.constant 0 : i32
    return %c0_i32, %c0_i32_0 : i32, i32
  }
  func.func @transform_8(%arg0: i32) -> (i32, i32, i32) {
    %c0_i32 = arith.constant 0 : i32
    %c0_i32_0 = arith.constant 0 : i32
    %c0_i32_1 = arith.constant 0 : i32
    return %arg0, %c0_i32, %c0_i32_0 : i32, i32, i32
  }
}

</mosaic_0001>

<bundles_post_ra>
// kernel: tpu_custom_call.1
= control target key start
LH: loop header
LB: loop body
LE: loop exit
PB: predicated region body
PF: predicated region fallthrough
CT: control target
= control target key end

     0   :  { %s2040_s0 = inlined_call_operand.hbm [shape: f32[2,8,128], index: 0, kind: input, shape index: {}]   ;;  %s2041_s1 = inlined_call_operand.hbm [shape: f32[2,8,8], index: 1, kind: input, shape index: {}]   ;;  %s2042_s2 = inlined_call_operand.hbm [shape: f32[128,128], index: 2, kind: input, shape index: {}]   ;;  %s2043_s3 = inlined_call_operand.vmem [shape: f32[1,128], index: 3, kind: input, shape index: {}]   ;;  %s2044_s4 = inlined_call_operand.hbm [shape: f32[128,128], index: 4, kind: input, shape index: {}]   ;;  %s2045_s5 = inlined_call_operand.vmem [shape: f32[1,128], index: 5, kind: input, shape index: {}]   ;;  %s2046_s6 = inlined_call_operand.hbm [shape: f32[128,128], index: 6, kind: input, shape index: {}]   ;;  %s2047_s7 = inlined_call_operand.vmem [shape: f32[1,128], index: 7, kind: input, shape index: {}]   ;;  %s2048_s8 = inlined_call_operand.hbm [shape: f32[2,8,128], index: 8, kind: output, shape index: {}]  }
   0x1   :  { %2055 = sst [smem:[#allocation19_spill]] %s2042_s2 }
   0x2   :  { %2056 = sst [smem:[#allocation20_spill]] %s2044_s4 }
   0x3   :  { %2057 = sst [smem:[#allocation21_spill]] %s2046_s6 }
   0x4   :  { %13 = vsyncpa [#allocation3], 0 }
   0x5   :  { %15 = vsyncpa [#allocation3 + $0x1], 0 }
   0x6   :  { %16 = vsyncpa [#allocation6], 0 }
   0x7   :  { %18 = vsyncpa [#allocation6 + $0x1], 0 }
   0x8   :  { %19 = vsyncpa [#allocation9], 0 }
   0x9   :  { %20 = vsyncpa [#allocation4], 0 }
   0xa   :  { %22 = vsyncpa [#allocation4 + $0x1], 0  ;;  %s1678_s27 = smov 0   ;;  %s1680_s28 = smov 0  }
   0xb   :  { %s1682_s29 = smov 0   ;;  %s1684_s30 = smov 0  }
   0xc LB: > { %2058 = sst [smem:[#allocation17_spill]] %s1608_s27  ;;  %s1699_s9 = sadd.s32 4294967295, %s1620_s30   ;;  %s1620_s30 = sphi %s1684_s30, %s2085_s30   ;;  %s1616_s29 = sphi %s1682_s29, %s2084_s29   ;;  %s1612_s28 = sphi %s1680_s28, %s2083_s28   ;;  %s1608_s27 = sphi %s1678_s27, %s2082_s27  }
   0xd   : > { %s1035_s10 = sadd.s32 4294967294, %s1620_s30   ;;  %p48_p0 = scmp.ne.s32.totalorder %s1612_s28, %s1608_s27 }
   0xe   : > { %p2049_p1 = scmp.eq.s32.totalorder %s1699_s9, 0  ;;  %p230_p3 = scmp.eq.s32.totalorder %s1035_s10, 1 }
   0xf   : > { %p1036_p5 = scmp.ge.s32.totalorder %s1620_s30, 1  ;;  %p237_p7 = scmp.lt.s32.totalorder %s1620_s30, 3 }
  0x10   : > { %p1708_p4 = por %p2049_p1, %p48_p0  ;;  %p1713_p6 = por %p230_p3, %p48_p0 }
  0x11   : > { %p1718_p8 = pnand %p1036_p5, %p237_p7  ;;  %s1622_s14 = smov [#allocation7]  }
  0x12   : > { %s2059_s11 = scalar_select %p1708_p4, 1, 0 }
  0x13   : > { %s2060_s12 = scalar_select %p1713_p6, 1, 0 }
  0x14   : > { %s2062_s13 = scalar_select %p1718_p8, 1, 0 }
  0x15   : > { %2061 = sst [smem:[#allocation18_spill]] %s2060_s12  ;;  %s249_s15 = sshll.u32 %s1622_s14, 4  ;;  %s1722_s15 = int_to_ptr.vmem [resolvable:$true] %s249_s15 }
  0x16   : > { %p1329_p9 = pneg %p1718_p8  ;;  %s1623_s17 = smov [#allocation8]  }
  0x17   : > { %s265_s18 = sshll.u32 %s1623_s17, 4  ;;  %s1624_s19 = smov [#allocation10]   ;;  %s1733_s18 = int_to_ptr.vmem [resolvable:$true] %s265_s18 }
  0x18   : > { %p1729_p11 = pnand %p1329_p9, %p2049_p1  ;;  %s1735_s20 = sshll.u32 %s1624_s19, 4  ;;  %s282_s20 = int_to_ptr.vmem [resolvable:$true] %s1735_s20 }
  0x19   : > { %s2064_s2 = sld [smem:[#allocation19_spill]] }
  0x1a   : > { %p1745_p13 = pneg %p1729_p11 }
  0x1f   : > { %s1398_s23 = scalar_lea.hbm %s2064_s2, 2048 }
  0x20   : > { %p1399_p12 = scmp.ne.s32.totalorder %s2064_s2, %s1398_s23  ;;  %p1405_p5 = scmp.lt.u32.totalorder %s1398_s23, %s2064_s2 }
  0x22   : > { %p1401_p0 = pnand %p1745_p13, %p1399_p12 }
  0x24   : > { %p1402_p3 = pneg %p1401_p0 }
  0x26   : > { %p1407_p7 = pnand %p1405_p5, %p1402_p3 }
  0x28   : > { %1410 = shalt.err (!%p1407_p7)
}
  0x29   : > { %s1411_s17 = scalar_lea.vmem %s1722_s15, 2048  ;;  %p1419_p2 = scmp.lt.s32.totalorder %s1722_s15, %s1722_s15 }
  0x2a   : > { %p1412_p9 = scmp.ne.s32.totalorder %s1722_s15, %s1411_s17  ;;  %p1420_p6 = scmp.lt.s32.totalorder %s1411_s17, %s1411_s17 }
  0x2c   : > { %p1414_p10 = pnand %p1412_p9, %p1745_p13  ;;  %p1421_p12 = por %p1420_p6, %p1419_p2 }
  0x2e   : > { %p1415_p1 = pneg %p1414_p10 }
  0x30   : > { %p1422_p0 = pnand %p1421_p12, %p1415_p1 }
  0x32   : > { %1425 = shalt.err (!%p1422_p0)
}
  0x33   : > { %s1625_s19 = smov 128   ;;  %s1626_s21 = smov 8  }
  0x34   : > { %1332 = dma.hbm_to_vmem [thread:$0]  (!%p1729_p11), %s2064_s2, 2048, %s1722_s15, [#allocation6], %s1625_s19, %s1625_s19, %s1626_s21  }
  0x35   : > { %s2066_s4 = sld [smem:[#allocation20_spill]] }
  0x3b   : > { %s1426_s10 = scalar_lea.hbm %s2066_s4, 2048 }
  0x3c   : > { %p1427_p1 = scmp.ne.s32.totalorder %s2066_s4, %s1426_s10  ;;  %p1433_p10 = scmp.lt.u32.totalorder %s1426_s10, %s2066_s4 }
  0x3e   : > { %p1429_p2 = pnand %p1427_p1, %p1745_p13 }
  0x40   : > { %p1430_p6 = pneg %p1429_p2 }
  0x42   : > { %p1435_p3 = pnand %p1433_p10, %p1430_p6 }
  0x44   : > { %1438 = shalt.err (!%p1435_p3)
}
  0x45   : > { %s1439_s15 = scalar_lea.vmem %s1733_s18, 2048  ;;  %p1447_p12 = scmp.lt.s32.totalorder %s1733_s18, %s1733_s18 }
  0x46   : > { %p1440_p5 = scmp.ne.s32.totalorder %s1733_s18, %s1439_s15  ;;  %p1448_p0 = scmp.lt.s32.totalorder %s1439_s15, %s1439_s15 }
  0x48   : > { %p1442_p7 = pnand %p1440_p5, %p1745_p13  ;;  %p1449_p1 = por %p1448_p0, %p1447_p12 }
  0x4a   : > { %p1443_p9 = pneg %p1442_p7 }
  0x4c   : > { %p1450_p2 = pnand %p1449_p1, %p1443_p9 }
  0x4e   : > { %1453 = shalt.err (!%p1450_p2)
}
  0x4f   : > { %1335 = dma.hbm_to_vmem [thread:$0]  (!%p1729_p11), %s2066_s4, 2048, %s1733_s18, [#allocation9], %s1625_s19, %s1625_s19, %s1626_s21  }
  0x50   : > { %s2067_s6 = sld [smem:[#allocation21_spill]] }
  0x56   : > { %s1454_s24 = scalar_lea.hbm %s2067_s6, 2048 }
  0x57   : > { %p1455_p6 = scmp.ne.s32.totalorder %s2067_s6, %s1454_s24  ;;  %p1461_p5 = scmp.lt.u32.totalorder %s1454_s24, %s2067_s6 }
  0x59   : > { %p1457_p10 = pnand %p1455_p6, %p1745_p13 }
  0x5b   : > { %p1458_p3 = pneg %p1457_p10 }
  0x5d   : > { %p1463_p7 = pnand %p1461_p5, %p1458_p3 }
  0x5f   : > { %1466 = shalt.err (!%p1463_p7)
}
  0x60   : > { %s1467_s15 = scalar_lea.vmem %s282_s20, 2048  ;;  %p1475_p1 = scmp.lt.s32.totalorder %s282_s20, %s282_s20 }
  0x61   : > { %p1468_p9 = scmp.ne.s32.totalorder %s282_s20, %s1467_s15  ;;  %p1476_p2 = scmp.lt.s32.totalorder %s1467_s15, %s1467_s15 }
  0x63   : > { %p1470_p12 = pnand %p1468_p9, %p1745_p13  ;;  %p1477_p4 = por %p1476_p2, %p1475_p1 }
  0x65   : > { %p1471_p0 = pneg %p1470_p12 }
  0x67   : > { %p1478_p8 = pnand %p1477_p4, %p1471_p0 }
  0x69   : > { %1481 = shalt.err (!%p1478_p8)
}
  0x6a   : > { %1338 = dma.hbm_to_vmem [thread:$0]  (!%p1729_p11), %s2067_s6, 2048, %s282_s20, [#allocation9], %s1625_s19, %s1625_s19, %s1626_s21  }
  0x6b   : > { %s1818_s26 = sadd.s32 1, %s1620_s30   ;;  %s35_s12 = sadd.s32 1, %s1616_s29 }
  0x6c   : > { %s32_s16 = ssub.s32 %s1620_s30, %s1818_s26  ;;  %p42_p8 = scmp.ne.s32.totalorder %s1616_s29, %s1612_s28 }
  0x6d   : > { %p33_p4 = scmp.eq.s32.totalorder %s32_s16, 0  ;;  %p43_p13 = scmp.eq.s32.totalorder %s1620_s30, 0 }
  0x6e   : > { %p1353_p6 = scmp.lt.s32.totalorder %s1620_s30, 2  ;;  %p2068_p3 = scmp.eq.s32.totalorder %s1699_s9, 1 }
  0x6f   : > { %s1828_s22 = scalar_select %p33_p4, %s1616_s29, %s35_s12  }
  0x70   : > { %p44_p10 = por %p43_p13, %p42_p8  ;;  %p1832_p5 = por %p2068_p3, %p42_p8 }
  0x71   : > { %s298_s24 = sand.u32 1, %s1616_s29   ;;  %s1042_s25 = sshll.u32 %s1620_s30, 7 }
  0x72   : > { %s2069_s23 = scalar_select %p1832_p5, 1, 0 }
  0x73   : > { %s1838_s20 = sshll.u32 %s298_s24, 3  ;;  %s1843_s10 = scalar_lea.hbm %s2040_s0, %s1042_s25 }
  0x74   : > { %s302_s14 = scalar_lea.vmem [#allocation2], %s1838_s20  ;;  %p1846_p11 = pnand %p1353_p6, %p44_p10 }
  0x75   : > { %s309_s17 = sshll.u32 %s302_s14, 4  ;;  %s1855_s16 = scalar_lea.hbm %s2041_s1, %s1042_s25  ;;  %s1850_s17 = int_to_ptr.vmem [resolvable:$true] %s309_s17 }
  0x76   : > { %s299_s12 = scalar_lea.sflag [#allocation3], %s298_s24  ;;  %s1482_s19 = scalar_lea.hbm %s1843_s10, 128 }
  0x77   : > { %p1483_p7 = scmp.ne.s32.totalorder %s1843_s10, %s1482_s19  ;;  %p1484_p9 = pneg %p1846_p11 }
  0x78   : > { %s1487_s2 = scalar_lea.hbm %s2040_s0, 256  ;;  %p1488_p1 = scmp.lt.u32.totalorder %s1843_s10, %s2040_s0 }
  0x79   : > { %p1485_p12 = pnand %p1484_p9, %p1483_p7  ;;  %p1489_p2 = scmp.lt.u32.totalorder %s1487_s2, %s1482_s19 }
  0x7a   : > { %p1491_p8 = scmp.lt.u32.totalorder %s1482_s19, %s1843_s10 }
  0x7b   : > { %p1486_p0 = pneg %p1485_p12  ;;  %p1490_p4 = por %p1489_p2, %p1488_p1 }
  0x7d   : > { %p1492_p13 = por %p1491_p8, %p1490_p4 }
  0x7f   : > { %p1493_p6 = pnand %p1492_p13, %p1486_p0 }
  0x81   : > { %1496 = shalt.err (!%p1493_p6)
}
  0x82   : > { %s1497_s24 = scalar_lea.vmem %s1850_s17, 128  ;;  %s1627_s25 = smov [#allocation2]  }
  0x83   : > { %p1498_p10 = scmp.ne.s32.totalorder %s1850_s17, %s1497_s24  ;;  %s1502_s18 = sshll.u32 %s1627_s25, 4  ;;  %s1503_s18 = int_to_ptr.vmem [resolvable:$false] %s1502_s18 }
  0x84   : > { %s1504_s4 = scalar_lea.vmem %s1503_s18, 256  ;;  %p1505_p12 = scmp.lt.s32.totalorder %s1850_s17, %s1503_s18 }
  0x85   : > { %p1500_p3 = pnand %p1498_p10, %p1484_p9  ;;  %p1506_p1 = scmp.lt.s32.totalorder %s1504_s4, %s1497_s24 }
  0x87   : > { %p1501_p7 = pneg %p1500_p3  ;;  %p1507_p2 = por %p1506_p1, %p1505_p12 }
  0x89   : > { %p1508_p4 = pnand %p1507_p2, %p1501_p7 }
  0x8b   : > { %1511 = shalt.err (!%p1508_p4)
}
  0x8c   : > { %1342 = dma.hbm_to_vmem [thread:$0]  (!%p1846_p11), %s1843_s10, 128, %s1850_s17, %s299_s12  }
  0x8d   : > { %s316_s2 = sand.u32 1, %s1620_s30   ;;  %s320_s6 = scalar_lea.vmem [#allocation5], %s1838_s20 }
  0x8e   : > { %s327_s27 = sshll.u32 %s320_s6, 4  ;;  %s317_s19 = scalar_lea.sflag [#allocation6], %s316_s2  ;;  %s328_s27 = int_to_ptr.vmem [resolvable:$true] %s327_s27 }
  0x8f   : > { %s1512_s21 = scalar_lea.hbm %s1855_s16, 128  ;;  %s1517_s25 = scalar_lea.hbm %s2041_s1, 256 }
  0x90   : > { %p1513_p0 = scmp.ne.s32.totalorder %s1855_s16, %s1512_s21  ;;  %p1518_p6 = scmp.lt.u32.totalorder %s1855_s16, %s2041_s1 }
  0x91   : > { %p1519_p10 = scmp.lt.u32.totalorder %s1517_s25, %s1512_s21  ;;  %p1521_p7 = scmp.lt.u32.totalorder %s1512_s21, %s1855_s16 }
  0x92   : > { %p1515_p8 = pnand %p1513_p0, %p1484_p9 }
  0x93   : > { %p1520_p3 = por %p1519_p10, %p1518_p6 }
  0x94   : > { %p1516_p13 = pneg %p1515_p8 }
  0x95   : > { %p1522_p12 = por %p1521_p7, %p1520_p3 }
  0x97   : > { %p1523_p1 = pnand %p1522_p12, %p1516_p13 }
  0x99   : > { %1526 = shalt.err (!%p1523_p1)
}
  0x9a   : > { %s1527_s20 = scalar_lea.vmem %s328_s27, 128  ;;  %s1628_s10 = smov [#allocation5]  }
  0x9b   : > { %p1528_p2 = scmp.ne.s32.totalorder %s328_s27, %s1527_s20  ;;  %s1532_s17 = sshll.u32 %s1628_s10, 4  ;;  %s1533_s17 = int_to_ptr.vmem [resolvable:$false] %s1532_s17 }
  0x9c   : > { %s1534_s12 = scalar_lea.vmem %s1533_s17, 256  ;;  %p1535_p8 = scmp.lt.s32.totalorder %s328_s27, %s1533_s17 }
  0x9d   : > { %p1530_p4 = pnand %p1528_p2, %p1484_p9  ;;  %p1536_p5 = scmp.lt.s32.totalorder %s1534_s12, %s1527_s20 }
  0x9f   : > { %p1531_p0 = pneg %p1530_p4  ;;  %p1537_p6 = por %p1536_p5, %p1535_p8 }
  0xa1   : > { %p1538_p10 = pnand %p1537_p6, %p1531_p0 }
  0xa3   : > { %1541 = shalt.err (!%p1538_p10)
}
  0xa4   : > { %1345 = dma.hbm_to_vmem [thread:$0]  (!%p1846_p11), %s1855_s16, 128, %s328_s27, %s317_s19  }
  0xa5   : > { %p2071_p13 = scmp.ne.s32.totalorder %s2062_s13, 0 }
  0xa6   : > { %s1906_s2 = sand.u32 (!%p2071_p13), 1, %s1612_s28   ;;  %p2072_p5 = scmp.ne.s32.totalorder (!%p2071_p13), %s2059_s11, 0 }
  0xa7   : > { %336 = sbr.rel (%p2071_p13) target bundleno = 1518 (0x5ee), region = 52  ;;  %s1909_s6 = sshll.u32 (!%p2071_p13), %s1906_s2, 3 }
  0xa8   : > { %s339_s21 = scalar_lea.sflag (!%p2071_p13), [#allocation3], %s1906_s2  ;;  %s342_s14 = scalar_lea.vmem (!%p2071_p13), [#allocation2], %s1909_s6 }
  0xae   : > { %1587 = dma.done.wait (%p2072_p5), %s339_s21, 128  }
  0xaf   : > { %1589 = vsyncadd (%p2072_p5), %s339_s21, 4294967168  ;;  %s347_s13 = sand.u32 1, %s1699_s9   ;;  %s351_s16 = scalar_lea.vmem [#allocation5], %s1909_s6 }
  0xb0   : > { %s348_s15 = scalar_lea.sflag [#allocation6], %s347_s13 }
  0xb1   : > { %1591 = dma.done.wait (%p2072_p5), %s348_s15, 128  }
  0xb2   : > { %1593 = vsyncadd (%p2072_p5), %s348_s15, 4294967168  ;;  %p2073_p11 = scmp.eq.s32.totalorder %s1699_s9, 0 }
  0xb4   : > { %1595 = dma.done.wait (%p2073_p11), [#allocation6], 2048   ;;  %p2074_p9 = pmov %p2073_p11 }
  0xb6   : > { %1597 = vsyncadd (%p2074_p9), [#allocation6], 4294965248  ;;  %p2075_p3 = pmov %p2074_p9 }
  0xb8   : > { %1599 = dma.done.wait (%p2075_p3), [#allocation9], 4096   ;;  %p2076_p7 = pmov %p2075_p3 }
  0xb9   : > { %v1629_v0 = vmov 0.0|0.0   ;;  %vm1630_vm0 = vmmov 0   ;;  %v1631_v1 = vmov 0.0   ;;  %v403_v2 = vld [vmem:[#allocation7] sm:$0xff]  ;;  %v404_v3 = vld [vmem:[#allocation7 + $0x8] sm:$0xff]  ;;  %v405_v4 = vld [vmem:[#allocation7 + $0x10] sm:$0xff] }
  0xba   : > { %1601 = vsyncadd (%p2076_p7), [#allocation9], 4294963200  ;;  %1239 = vmatprep.subr.bf16.mxu0 %v1629_v0  ;;  %1151 = vmatprep.mubr.msk.f32.mxu0 %vm1630_vm0, %v1631_v1  ;;  %v1240_v5 = vpack.c.bf16 %v404_v3, %v403_v2  ;;  %v406_v6 = vld [vmem:[#allocation7 + $0x18] sm:$0xff]  ;;  %v407_v8 = vld [vmem:[#allocation7 + $0x20] sm:$0xff]  ;;  %vm496_vm1 = vcmask 64512   ;;  %s1059_s4 = sshll.u32 %s1699_s9, 7 }
  0xbb   : > { %1263 = vmatprep.subr.bf16.mxu1 %v1629_v0  ;;  %1191 = vmatprep.mubr.msk.f32.mxu1 %vm1630_vm0, %v1631_v1  ;;  %v1243_v7 = vpack.c.bf16 %v406_v6, %v405_v4  ;;  %v408_v9 = vld [vmem:[#allocation7 + $0x28] sm:$0xff]  ;;  %v409_v11 = vld [vmem:[#allocation7 + $0x30] sm:$0xff]  ;;  %v410_v12 = vld [vmem:[#allocation7 + $0x38] sm:$0xff]  ;;  %s400_s20 = scalar_lea.vmem [#allocation11], %s1909_s6  ;;  %s1996_s21 = scalar_lea.hbm %s2048_s8, %s1059_s4 }
  0xbc   : > { %1241 = vmatpush3.bf16.msra.mxu0 %v1240_v5  ;;  %v1246_v10 = vpack.c.bf16 %v408_v9, %v407_v8  ;;  %v1249_v13 = vpack.c.bf16 %v410_v12, %v409_v11  ;;  %v411_v14 = vld [vmem:[#allocation7 + $0x40] sm:$0xff]  ;;  %v412_v15 = vld [vmem:[#allocation7 + $0x48] sm:$0xff]  ;;  %v413_v17 = vld [vmem:[#allocation7 + $0x50] sm:$0xff]  ;;  %s914_s10 = sshll.u32 %s400_s20, 4  ;;  %p2077_p1 = scmp.ne.s32.totalorder %s2069_s23, 0  ;;  %s1998_s10 = int_to_ptr.vmem [resolvable:$true] %s914_s10 }
  0xbd   : > { %1242 = vmatprep.subr.bf16.mxu0 %v1629_v0  ;;  %v1252_v16 = vpack.c.bf16 %v412_v15, %v411_v14  ;;  %v414_v18 = vld [vmem:[#allocation7 + $0x58] sm:$0xff]  ;;  %v415_v20 = vld [vmem:[#allocation7 + $0x60] sm:$0xff]  ;;  %v416_v21 = vld [vmem:[#allocation7 + $0x68] sm:$0xff]  ;;  %s1542_s13 = scalar_lea.vmem %s1998_s10, 128  ;;  %s1632_s9 = smov [#allocation11]  }
  0xbe   : > { %v1255_v19 = vpack.c.bf16 %v414_v18, %v413_v17  ;;  %v1258_v22 = vpack.c.bf16 %v416_v21, %v415_v20  ;;  %v417_v23 = vld [vmem:[#allocation7 + $0x70] sm:$0xff]  ;;  %v418_v24 = vld [vmem:[#allocation7 + $0x78] sm:$0xff]  ;;  %v402_v26 = vld [vmem:[%s342_s14] sm:$0xff]  ;;  %s901_s14 = scalar_lea.sflag [#allocation4], %s1906_s2  ;;  %p1543_p12 = scmp.ne.s32.totalorder %s1998_s10, %s1542_s13 }
  0xbf   : > { %v1261_v25 = vpack.c.bf16 %v418_v24, %v417_v23  ;;  %v570_v27 = vld [vmem:[#allocation8] sm:$0xff]  ;;  %v571_v28 = vld [vmem:[#allocation8 + $0x8] sm:$0xff]  ;;  %v572_v29 = vld [vmem:[#allocation8 + $0x10] sm:$0xff]  ;;  %s1546_s6 = sshll.u32 %s1632_s9, 4  ;;  %s1547_s6 = int_to_ptr.vmem [resolvable:$false] %s1546_s6 }
  0xc0   : > { %1244 = vmatpush3.bf16.msra.mxu0 %v1243_v7  ;;  %v1264_v30 = vpack.c.bf16 %v571_v28, %v570_v27  ;;  %v573_v31 = vld [vmem:[#allocation8 + $0x18] sm:$0xff]  ;;  %v574_v33 = vld [vmem:[#allocation8 + $0x20] sm:$0xff]  ;;  %v575_v34 = vld [vmem:[#allocation8 + $0x28] sm:$0xff]  ;;  %p1544_p2 = pnand %p1543_p12, %p2077_p1  ;;  %s1548_s15 = scalar_lea.vmem %s1547_s6, 256 }
  0xc1   : > { %1245 = vmatprep.subr.bf16.mxu0 %v1629_v0  ;;  %v1267_v32 = vpack.c.bf16 %v573_v31, %v572_v29  ;;  %v1270_v35 = vpack.c.bf16 %v575_v34, %v574_v33  ;;  %v576_v36 = vld [vmem:[#allocation8 + $0x30] sm:$0xff]  ;;  %v577_v37 = vld [vmem:[#allocation8 + $0x38] sm:$0xff]  ;;  %v578_v39 = vld [vmem:[#allocation8 + $0x40] sm:$0xff]  ;;  %p1549_p0 = scmp.lt.s32.totalorder %s1998_s10, %s1547_s6  ;;  %p1550_p8 = scmp.lt.s32.totalorder %s1548_s15, %s1542_s13 }
  0xc2   : > { %1265 = vmatpush3.bf16.msra.mxu1 %v1264_v30  ;;  %v1273_v38 = vpack.c.bf16 %v577_v37, %v576_v36  ;;  %v579_v40 = vld [vmem:[#allocation8 + $0x48] sm:$0xff]  ;;  %v580_v42 = vld [vmem:[#allocation8 + $0x50] sm:$0xff]  ;;  %v581_v43 = vld [vmem:[#allocation8 + $0x58] sm:$0xff]  ;;  %p1545_p4 = pneg %p1544_p2 }
  0xc3   : > { %1266 = vmatprep.subr.bf16.mxu1 %v1629_v0  ;;  %v1276_v41 = vpack.c.bf16 %v579_v40, %v578_v39  ;;  %v1279_v44 = vpack.c.bf16 %v581_v43, %v580_v42  ;;  %v582_v45 = vld [vmem:[#allocation8 + $0x60] sm:$0xff]  ;;  %v583_v46 = vld [vmem:[#allocation8 + $0x68] sm:$0xff]  ;;  %v584_v48 = vld [vmem:[#allocation8 + $0x70] sm:$0xff]  ;;  %p1551_p6 = por %p1550_p8, %p1549_p0 }
  0xc4   : > { %1247 = vmatpush3.bf16.msra.mxu0 %v1246_v10  ;;  %v1282_v47 = vpack.c.bf16 %v583_v46, %v582_v45  ;;  %v585_v49 = vld [vmem:[#allocation8 + $0x78] sm:$0xff]  ;;  %v1052_v51 = vld [vmem:[%s2043_s3] ss:$0 sm:$0xff]  ;;  %v734_v59 = vld [vmem:[#allocation10 + $0x8] sm:$0xff] }
  0xc5   : > { %1248 = vmatprep.subr.bf16.mxu0 %v1629_v0  ;;  %v1285_v50 = vpack.c.bf16 %v585_v49, %v584_v48  ;;  %v1962_v55 = vld [vmem:[%s351_s16] sm:$0xff]  ;;  %v733_v58 = vld [vmem:[#allocation10] sm:$0xff]  ;;  %v738_v3 = vld [vmem:[#allocation10 + $0x28] sm:$0xff]  ;;  %p1552_p10 = pnand %p1551_p6, %p1545_p4 }
  0xc6   : > { %1268 = vmatpush3.bf16.msra.mxu1 %v1267_v32  ;;  %v735_v60 = vld [vmem:[#allocation10 + $0x10] sm:$0xff]  ;;  %v1288_v61 = vpack.c.bf16 %v734_v59, %v733_v58  ;;  %v736_v62 = vld [vmem:[#allocation10 + $0x18] sm:$0xff]  ;;  %v737_v2 = vld [vmem:[#allocation10 + $0x20] sm:$0xff] }
  0xc7   : > { %1269 = vmatprep.subr.bf16.mxu1 %v1629_v0  ;;  %v1291_v63 = vpack.c.bf16 %v736_v62, %v735_v60  ;;  %v1294_v4 = vpack.c.bf16 %v738_v3, %v737_v2  ;;  %v739_v5 = vld [vmem:[#allocation10 + $0x30] sm:$0xff]  ;;  %v740_v6 = vld [vmem:[#allocation10 + $0x38] sm:$0xff]  ;;  %v741_v8 = vld [vmem:[#allocation10 + $0x40] sm:$0xff] }
  0xc8   : > { %1250 = vmatpush3.bf16.msra.mxu0 %v1249_v13  ;;  %v1297_v7 = vpack.c.bf16 %v740_v6, %v739_v5  ;;  %v742_v9 = vld [vmem:[#allocation10 + $0x48] sm:$0xff]  ;;  %v743_v11 = vld [vmem:[#allocation10 + $0x50] sm:$0xff]  ;;  %v744_v12 = vld [vmem:[#allocation10 + $0x58] sm:$0xff] }
  0xc9   : > { %1251 = vmatprep.subr.bf16.mxu0 %v1629_v0  ;;  %v1300_v10 = vpack.c.bf16 %v742_v9, %v741_v8  ;;  %v1303_v13 = vpack.c.bf16 %v744_v12, %v743_v11  ;;  %v745_v14 = vld [vmem:[#allocation10 + $0x60] sm:$0xff]  ;;  %v746_v15 = vld [vmem:[#allocation10 + $0x68] sm:$0xff]  ;;  %v747_v17 = vld [vmem:[#allocation10 + $0x70] sm:$0xff] }
  0xca   : > { %1271 = vmatpush3.bf16.msra.mxu1 %v1270_v35  ;;  %v748_v18 = vld [vmem:[#allocation10 + $0x78] sm:$0xff]  ;;  %v1054_v20 = vld [vmem:[%s2045_s5] ss:$0 sm:$0xff] }
  0xcb   : > { %1272 = vmatprep.subr.bf16.mxu1 %v1629_v0 }
  0xcc   : > { %1253 = vmatpush3.bf16.msra.mxu0 %v1252_v16  ;;  %v1306_v16 = vpack.c.bf16 %v746_v15, %v745_v14 }
  0xcd   : > { %1254 = vmatprep.subr.bf16.mxu0 %v1629_v0 }
  0xce   : > { %1274 = vmatpush3.bf16.msra.mxu1 %v1273_v38 }
  0xcf   : > { %1275 = vmatprep.subr.bf16.mxu1 %v1629_v0 }
  0xd0   : > { %1256 = vmatpush3.bf16.msra.mxu0 %v1255_v19  ;;  %v1309_v19 = vpack.c.bf16 %v748_v18, %v747_v17 }
  0xd1   : > { %1257 = vmatprep.subr.bf16.mxu0 %v1629_v0 }
  0xd2   : > { %1277 = vmatpush3.bf16.msra.mxu1 %v1276_v41 }
  0xd3   : > { %1278 = vmatprep.subr.bf16.mxu1 %v1629_v0 }
  0xd4   : > { %1259 = vmatpush3.bf16.msra.mxu0 %v1258_v22 }
  0xd5   : > { %1260 = vmatprep.subr.bf16.mxu0 %v1629_v0 }
  0xd6   : > { %1280 = vmatpush3.bf16.msra.mxu1 %v1279_v44 }
  0xd7   : > { %1281 = vmatprep.subr.bf16.mxu1 %v1629_v0 }
  0xd8   : > { %1262 = vmatpush3.bf16.msra.mxu0 %v1261_v25 }
  0xd9   : > { %1154 = vmatprep.subr.mxu0 %v1631_v1 }
  0xda   : > { %1283 = vmatpush3.bf16.msra.mxu1 %v1282_v47 }
  0xdb   : > { %1152 = vmatmul.mubr.f32.vlgmr.msra.gmra.mrb[0].mxu0 %v402_v26  ;;  %1284 = vmatprep.subr.bf16.mxu1 %v1629_v0  ;;  %v1056_v26 = vld [vmem:[%s2047_s7] ss:$0 sm:$0xff] }
  0xdc   : > { %1156 = vmatprep.mubr.msk.f32.mxu0 %vm1630_vm0, %v1631_v1 }
  0xde   : > { %1286 = vmatpush3.bf16.msra.mxu1 %v1285_v50 }
  0xdf   : > { %1287 = vmatprep.subr.bf16.mxu1 %v1629_v0 }
 0x1ae   : > { %v492_v52 = vpop.f32.mrb[0].mxu0 }
 0x1af   : > { %v493_v53 = vadd.f32 %v1052_v51, %v492_v52  ;;  %v1153_v54 = vpop.f32.mrb[1].mxu0 }
 0x1b1   : > { %1155 = vmatpush3.msra.mxu0 %v493_v53 }
 0x1b2   : > { %1157 = vmatmul.mubr.msk.f32.vlgmr.msra.gmra.mrb[2].mxu0 %vm496_vm1, %v1962_v55  ;;  %1194 = vmatprep.subr.mxu0 %v1631_v1 }
 0x1b3   : > { %1196 = vmatprep.mubr.msk.f32.mxu0 %vm1630_vm0, %v1631_v1 }
 0x285   : > { %v566_v56 = vpop.f32.mrb[2].mxu0 }
 0x286   : > { %v1158_v57 = vpop.f32.mrb[3].mxu0  ;;  %1192 = vmatmul.mubr.f32.vlgmr.msra.gmra.mrb[0].mxu1 %v566_v56 }
 0x287   : > { %1231 = vmatprep.mubr.msk.f32.mxu1 %vm1630_vm0, %v1631_v1  ;;  %1289 = vmatpush3.bf16.msra.mxu1 %v1288_v61 }
 0x288   : > { %1290 = vmatprep.subr.bf16.mxu1 %v1629_v0 }
 0x28b   : > { %1292 = vmatpush3.bf16.msra.mxu1 %v1291_v63 }
 0x28c   : > { %1293 = vmatprep.subr.bf16.mxu1 %v1629_v0 }
 0x28f   : > { %1295 = vmatpush3.bf16.msra.mxu1 %v1294_v4 }
 0x290   : > { %1296 = vmatprep.subr.bf16.mxu1 %v1629_v0 }
 0x293   : > { %1298 = vmatpush3.bf16.msra.mxu1 %v1297_v7 }
 0x294   : > { %1299 = vmatprep.subr.bf16.mxu1 %v1629_v0 }
 0x297   : > { %1301 = vmatpush3.bf16.msra.mxu1 %v1300_v10 }
 0x298   : > { %1302 = vmatprep.subr.bf16.mxu1 %v1629_v0 }
 0x29b   : > { %1304 = vmatpush3.bf16.msra.mxu1 %v1303_v13 }
 0x29c   : > { %1305 = vmatprep.subr.bf16.mxu1 %v1629_v0 }
 0x29f   : > { %1307 = vmatpush3.bf16.msra.mxu1 %v1306_v16 }
 0x2a0   : > { %1308 = vmatprep.subr.bf16.mxu1 %v1629_v0 }
 0x2a3   : > { %1310 = vmatpush3.bf16.msra.mxu1 %v1309_v19 }
 0x359   : > { %v659_v21 = vpop.f32.mrb[0].mxu1 }
 0x35a   : > { %v660_v22 = vadd.f32 %v1054_v20, %v659_v21  ;;  %v1193_v23 = vpop.f32.mrb[1].mxu1 }
 0x35c   : > { %1195 = vmatpush3.msra.mxu0 %v660_v22 }
 0x35d   : > { %1197 = vmatmul.mubr.msk.f32.vlgmr.msra.gmra.mrb[4].mxu0 %vm496_vm1, %v1962_v55  ;;  %1234 = vmatprep.subr.mxu0 %v1631_v1 }
 0x35e   : > { %1236 = vmatprep.mubr.msk.f32.mxu0 %vm1630_vm0, %v1631_v1 }
 0x430   : > { %v729_v0 = vpop.f32.mrb[4].mxu0 }
 0x431   : > { %v896_v24 = vadd.f32 %v729_v0, %v566_v56  ;;  %v1198_v25 = vpop.f32.mrb[5].mxu0  ;;  %1232 = vmatmul.mubr.f32.vlgmr.msra.gmra.mrb[2].mxu1 %v729_v0 }
 0x504   : > { %v822_v27 = vpop.f32.mrb[2].mxu1 }
 0x505   : > { %v823_v28 = vadd.f32 %v1056_v26, %v822_v27  ;;  %v1233_v29 = vpop.f32.mrb[3].mxu1 }
 0x507   : > { %1235 = vmatpush3.msra.mxu0 %v823_v28 }
 0x508   : > { %1237 = vmatmul.mubr.msk.f32.vlgmr.msra.gmra.mrb[6].mxu0 %vm496_vm1, %v1962_v55 }
 0x5db   : > { %v892_v30 = vpop.f32.mrb[6].mxu0 }
 0x5dc   : > { %v897_v1 = vadd.f32 %v896_v24, %v892_v30  ;;  %v1238_v31 = vpop.f32.mrb[7].mxu0 }
 0x5de   : > { %v898_v32 = vmul.f32 0.33333334, %v897_v1 }
 0x5e0   : > { %899 = vst [vmem:[%s400_s20] sm:$0xff] %v898_v32 }
 0x5e1   : > { %1555 = shalt.err (!%p1552_p10)
}
 0x5e2   : > { %s1556_s2 = scalar_lea.hbm %s1996_s21, 128  ;;  %s1560_s27 = scalar_lea.hbm %s2048_s8, 256 }
 0x5e3   : > { %p1557_p13 = scmp.ne.s32.totalorder %s1996_s21, %s1556_s2  ;;  %p1561_p9 = scmp.lt.u32.totalorder %s1996_s21, %s2048_s8 }
 0x5e4   : > { %p1562_p3 = scmp.lt.u32.totalorder %s1560_s27, %s1556_s2  ;;  %p1564_p12 = scmp.lt.u32.totalorder %s1556_s2, %s1996_s21 }
 0x5e5   : > { %p1558_p5 = pnand %p1557_p13, %p2077_p1 }
 0x5e6   : > { %p1563_p7 = por %p1562_p3, %p1561_p9 }
 0x5e7   : > { %p1559_p11 = pneg %p1558_p5 }
 0x5e8   : > { %p1565_p2 = por %p1564_p12, %p1563_p7 }
 0x5ea   : > { %p1566_p4 = pnand %p1565_p2, %p1559_p11 }
 0x5ec   : > { %1569 = shalt.err (!%p1566_p4)
}
 0x5ed   : > { %1327 = dma.vmem_to_hbm [thread:$0]  (%p2077_p1), %s1998_s10, 128, %s1996_s21, %s901_s14  }
 0x5ee PF: > { %s2078_s25 = sld [smem:[#allocation17_spill]]  ;;  %s2079_s18 = sld [smem:[#allocation18_spill]] }
 0x5ef   : > { %p2081_p8 = scmp.ge.s32.totalorder %s1620_s30, 2 }
 0x5f4   : > { %s926_s4 = sand.u32 1, %s2078_s25   ;;  %p2080_p0 = scmp.ne.s32.totalorder %s2079_s18, 0 }
 0x5f5   : > { %s927_s20 = scalar_lea.sflag [#allocation4], %s926_s4 }
 0x5f6   : > { %p1347_p6 = pnand %p2081_p8, %p2080_p0 }
 0x5f8   : > { %1603 = dma.done.wait (!%p1347_p6), %s927_s20, 128  }
 0x5f9   : > { %1605 = vsyncadd (!%p1347_p6), %s927_s20, 4294967168  ;;  %p25_p10 = scmp.ge.s32.totalorder %s1818_s26, 4   ;;  %s2082_s27 = smov %s1612_s28 }
 0x5fa   : > { %s2083_s28 = smov %s1616_s29  ;;  %s2084_s29 = smov %s1828_s22 }
 0x5fb   : > { %s2085_s30 = smov %s1818_s26  ;;  %27 = sbr.rel (!%p25_p10) target bundleno = 12 (0xc), region = 122 }
 0x602   :  { %932 = vsyncpa [#allocation3], 1 }
 0x603   :  { %934 = vsyncpa [#allocation3 + $0x1], 1 }
 0x604   :  { %935 = vsyncpa [#allocation6], 1 }
 0x605   :  { %937 = vsyncpa [#allocation6 + $0x1], 1 }
 0x606   :  { %938 = vsyncpa [#allocation9], 1 }
 0x607   :  { %939 = vsyncpa [#allocation4], 1 }
 0x608   :  { %941 = vsyncpa [#allocation4 + $0x1], 1 }

</bundles_post_ra>
